<compile_context>
chip_gen: v7x
topology: tpu7x:2x2x1
jax: 0.10.0
libtpu: 0.0.40
codegen_flags: <defaults>
</compile_context>

<pallas_src>
import functools

import jax
import jax.numpy as jnp
from jax.experimental import pallas as pl
from jax.experimental.pallas import tpu as pltpu

EPS = 1e-5


# ----------------------------------------------------------------------------
# Kernel: dilated conv1d (kt=3, BN folded) + ReLU + residual + mask
# ----------------------------------------------------------------------------
def _dilated_residual_kernel(x_ref, m_ref, w_ref, s_ref, o_ref, *, d):
    # x_ref : (Nb, C, T)      activations (caller dtype), T on lanes
    # m_ref : (Nb, 1, T)      mask row (channel 0 already sliced on host)
    # w_ref : (3, Cout, Cin)  BN-folded conv taps [k=0, k=1, k=2]
    # s_ref : (Cout, 1) f32   folded conv bias + BN shift
    # o_ref : (Nb, Cout, T)   output (caller dtype)
    nb, _, t = x_ref.shape

    # Single lane-index row; broadcast into the two selects below.
    col = jax.lax.broadcasted_iota(jnp.int32, (1, t), 1)

    w0 = w_ref[0]
    w1 = w_ref[1]
    w2 = w_ref[2]
    shift = s_ref[...]                                   # (Cout, 1) f32

    for i in range(nb):                                  # static unroll over the batch block
        x = x_ref[i]                                     # (C, T)

        # tap k=0 needs x[:, t-d], tap k=2 needs x[:, t+d]; out-of-range -> 0,
        # reproducing Conv1d's zero padding of `dilation` on each side
        # (also correct for the d >= T corner case).
        x_m = jnp.where(col >= d, pltpu.roll(x, shift=d % t, axis=1), 0.0)
        x_p = jnp.where(col < t - d, pltpu.roll(x, shift=(t - d) % t, axis=1), 0.0)

        # Three accumulating MXU dots (no (3C, T) concat materialized).
        acc = jnp.dot(w0, x_m, preferred_element_type=jnp.float32)
        acc += jnp.dot(w1, x, preferred_element_type=jnp.float32)
        acc += jnp.dot(w2, x_p, preferred_element_type=jnp.float32)

        y = jnp.maximum(acc + shift, 0.0) + x.astype(jnp.float32)   # ReLU, residual
        o_ref[i] = (y * m_ref[i].astype(jnp.float32)).astype(o_ref.dtype)


# ----------------------------------------------------------------------------
# Wrapper
# ----------------------------------------------------------------------------
def dilated_residual_layer(x, mask, w, b, gamma, beta, running_mean, running_var,
                           *, dilation, eps=EPS):
    """x: (N, C, T), mask: (N, Cm, T), w: (Cout, Cin, 3) -> (N, Cout, T) in x.dtype."""
    N, C, T = x.shape
    Cout, Cin, kt = w.shape
    assert kt == 3 and Cin == C and Cout == C, "residual needs Cin == Cout, kernel=3"

    cdt = x.dtype

    # ---- Fold BatchNorm1d (eval mode) + conv bias into weights & one shift ----
    scale = gamma.astype(jnp.float32) * jax.lax.rsqrt(running_var.astype(jnp.float32) + eps)
    shift_total = (b.astype(jnp.float32) * scale
                   + beta.astype(jnp.float32)
                   - running_mean.astype(jnp.float32) * scale)       # (Cout,)
    w_folded = w.astype(jnp.float32) * scale[:, None, None]          # (Cout, Cin, 3)
    w_taps = jnp.moveaxis(w_folded, 2, 0).astype(cdt)                # (3, Cout, Cin)
    s_c = shift_total.reshape(Cout, 1)                               # (Cout, 1) f32
    m1 = mask[:, 0:1, :].astype(cdt)                                 # (N, 1, T)

    # ---- Batch blocking: amortize per-step overhead while bounding VMEM ----
    xsz = x.dtype.itemsize
    per_elem = 3 * C * T * xsz + 2 * Cout * T * 4 + T * xsz          # x + rolls + acc/out + mask
    nb_cap = max(1, min(16, (6 << 20) // max(per_elem, 1)))
    nb = max(k for k in range(1, N + 1) if N % k == 0 and k <= nb_cap)

    # ---- Explicit VMEM budget for whole-T blocks (see T-tiling TODO above) ----
    io_block = nb * (2 * C * T * xsz + T * xsz)                      # x + out + mask (per buf)
    interm = nb * (2 * C * T * xsz + 2 * Cout * T * 4)               # rolled copies + f32 temps
    w_bytes = 3 * Cout * Cin * xsz + Cout * 4
    vmem_limit = int(min(max(2 * io_block + interm + w_bytes + (1 << 20), 32 << 20), 100 << 20))

    kern = functools.partial(_dilated_residual_kernel, d=int(dilation))
    return pl.pallas_call(
        kern,
        out_shape=jax.ShapeDtypeStruct((N, Cout, T), cdt),
        grid=(N // nb,),
        in_specs=[
            pl.BlockSpec((nb, C, T), lambda i: (i, 0, 0)),
            pl.BlockSpec((nb, 1, T), lambda i: (i, 0, 0)),
            pl.BlockSpec((3, Cout, Cin), lambda i: (0, 0, 0)),
            pl.BlockSpec((Cout, 1), lambda i: (0, 0)),
        ],
        out_specs=pl.BlockSpec((nb, Cout, T), lambda i: (i, 0, 0)),
        compiler_params=pltpu.CompilerParams(
            dimension_semantics=("parallel",),
            vmem_limit_bytes=vmem_limit),
    )(x, m1, w_taps, s_c)


# ----------------------------------------------------------------------------
# Pure-JAX reference (for correctness check)
# ----------------------------------------------------------------------------
def _reference(x, mask, w, b, gamma, beta, mean, var, *, dilation, eps=EPS):
    out = jax.lax.conv_general_dilated(
        x, w, window_strides=(1,), padding=[(dilation, dilation)],
        rhs_dilation=(dilation,), dimension_numbers=("NCH", "OIH", "NCH"))
    out = out + b[None, :, None]
    scale = gamma * jax.lax.rsqrt(var + eps)
    shift = beta - mean * scale
    out = out * scale[None, :, None] + shift[None, :, None]
    out = jnp.maximum(out, 0.0) + x
    return out * mask[:, 0:1, :]


# ----------------------------------------------------------------------------
if __name__ == "__main__":
    N, C, T = 2, 32, 128
    dilation = 2

    key = jax.random.PRNGKey(0)
    ks = jax.random.split(key, 8)
    x = jax.random.normal(ks[0], (N, C, T), jnp.float32)
    mask = (jax.random.uniform(ks[1], (N, 4, T)) > 0.25).astype(jnp.float32)
    w = 0.1 * jax.random.normal(ks[2], (C, C, 3), jnp.float32)
    b = 0.05 * jax.random.normal(ks[3], (C,), jnp.float32)
    gamma = 1.0 + 0.1 * jax.random.normal(ks[4], (C,), jnp.float32)
    beta = 0.05 * jax.random.normal(ks[5], (C,), jnp.float32)
    mean = 0.05 * jax.random.normal(ks[6], (C,), jnp.float32)
    var = 1.0 + 0.1 * jax.random.uniform(ks[7], (C,), jnp.float32)

    fwd = jax.jit(functools.partial(dilated_residual_layer, dilation=dilation))
    out = fwd(x, mask, w, b, gamma, beta, mean, var)
    jax.block_until_ready(out)

    ref = _reference(x, mask, w, b, gamma, beta, mean, var, dilation=dilation)
    assert out.shape == (N, C, T), out.shape
    assert out.dtype == x.dtype
    max_err = float(jnp.max(jnp.abs(out - ref)))
    assert jnp.allclose(out, ref, rtol=1e-4, atol=1e-4), max_err
    print("KERNEL_OK")
</pallas_src>

<mosaic_0001>
module attributes {stable_mosaic.version = 11 : i64} {
  func.func @_dilated_residual_kernel(%arg0: i32, %arg1: memref<2x32x128xf32, #tpu.memory_space<vmem>>, %arg2: memref<2x1x128xf32, #tpu.memory_space<vmem>>, %arg3: memref<3x32x32xf32, #tpu.memory_space<vmem>>, %arg4: memref<32x1xf32, #tpu.memory_space<vmem>>, %arg5: memref<2x32x128xf32, #tpu.memory_space<vmem>>) attributes {dimension_semantics = [#tpu.dimension_semantics<parallel>], iteration_bounds = array<i64: 1>, scalar_prefetch = 0 : i64, scratch_operands = 0 : i64, tpu.core_type = #tpu.core_type<tc>, window_params = [{transform_indices = @transform_0, window_bounds = array<i64: 2, 32, 128>}, {transform_indices = @transform_1, window_bounds = array<i64: 2, 1, 128>}, {pipeline_mode = #tpu.pipeline_mode<synchronous>, transform_indices = @transform_2, window_bounds = array<i64: 3, 32, 32>}, {pipeline_mode = #tpu.pipeline_mode<synchronous>, transform_indices = @transform_3, window_bounds = array<i64: 32, 1>}, {transform_indices = @transform_4, window_bounds = array<i64: 2, 32, 128>}]} {
    %0 = tpu.iota {dimensions = array<i32: 1>} : vector<1x128xi32>
    %c0 = arith.constant 0 : index
    %c0_0 = arith.constant 0 : index
    %c0_1 = arith.constant 0 : index
    %1 = vector.load %arg3[%c0, %c0_0, %c0_1] : memref<3x32x32xf32, #tpu.memory_space<vmem>>, vector<1x32x32xf32>
    %2 = vector.shape_cast %1 : vector<1x32x32xf32> to vector<32x32xf32>
    %c1 = arith.constant 1 : index
    %c0_2 = arith.constant 0 : index
    %c0_3 = arith.constant 0 : index
    %3 = vector.load %arg3[%c1, %c0_2, %c0_3] : memref<3x32x32xf32, #tpu.memory_space<vmem>>, vector<1x32x32xf32>
    %4 = vector.shape_cast %3 : vector<1x32x32xf32> to vector<32x32xf32>
    %c2 = arith.constant 2 : index
    %c0_4 = arith.constant 0 : index
    %c0_5 = arith.constant 0 : index
    %5 = vector.load %arg3[%c2, %c0_4, %c0_5] : memref<3x32x32xf32, #tpu.memory_space<vmem>>, vector<1x32x32xf32>
    %6 = vector.shape_cast %5 : vector<1x32x32xf32> to vector<32x32xf32>
    %c0_6 = arith.constant 0 : index
    %c0_7 = arith.constant 0 : index
    %7 = vector.load %arg4[%c0_6, %c0_7] : memref<32x1xf32, #tpu.memory_space<vmem>>, vector<32x1xf32>
    %c0_8 = arith.constant 0 : index
    %c0_9 = arith.constant 0 : index
    %c0_10 = arith.constant 0 : index
    %8 = vector.load %arg1[%c0_8, %c0_9, %c0_10] : memref<2x32x128xf32, #tpu.memory_space<vmem>>, vector<1x32x128xf32>
    %9 = vector.shape_cast %8 : vector<1x32x128xf32> to vector<32x128xf32>
    %c2_i32 = arith.constant 2 : i32
    %10 = vector.broadcast %c2_i32 : i32 to vector<1x128xi32>
    %11 = arith.cmpi sge, %0, %10 : vector<1x128xi32>
    %c2_i32_11 = arith.constant 2 : i32
    %12 = tpu.dynamic_rotate %9 by %c2_i32_11 dim 1 : vector<32x128xf32>, i32 -> vector<32x128xf32>
    %cst = arith.constant 0.000000e+00 : f32
    %13 = vector.shape_cast %11 : vector<1x128xi1> to vector<1x128xi1>
    %14 = vector.broadcast %13 : vector<1x128xi1> to vector<32x128xi1>
    %15 = vector.broadcast %cst : f32 to vector<32x128xf32>
    %16 = arith.select %14, %12, %15 : vector<32x128xi1>, vector<32x128xf32>
    %c126_i32 = arith.constant 126 : i32
    %17 = vector.broadcast %c126_i32 : i32 to vector<1x128xi32>
    %18 = arith.cmpi slt, %0, %17 : vector<1x128xi32>
    %c126_i32_12 = arith.constant 126 : i32
    %19 = tpu.dynamic_rotate %9 by %c126_i32_12 dim 1 : vector<32x128xf32>, i32 -> vector<32x128xf32>
    %cst_13 = arith.constant 0.000000e+00 : f32
    %20 = vector.shape_cast %18 : vector<1x128xi1> to vector<1x128xi1>
    %21 = vector.broadcast %20 : vector<1x128xi1> to vector<32x128xi1>
    %22 = vector.broadcast %cst_13 : f32 to vector<32x128xf32>
    %23 = arith.select %21, %19, %22 : vector<32x128xi1>, vector<32x128xf32>
    %cst_14 = arith.constant dense<0.000000e+00> : vector<32x128xf32>
    %24 = tpu.matmul %2, %16, %cst_14 {dimension_numbers = #tpu.dot_dimension_numbers<[1], [0], [0], [1], [0, 0, 1, 1], [], []>} : vector<32x32xf32>, vector<32x128xf32>, vector<32x128xf32> -> vector<32x128xf32>
    %cst_15 = arith.constant dense<0.000000e+00> : vector<32x128xf32>
    %25 = tpu.matmul %4, %9, %cst_15 {dimension_numbers = #tpu.dot_dimension_numbers<[1], [0], [0], [1], [0, 0, 1, 1], [], []>} : vector<32x32xf32>, vector<32x128xf32>, vector<32x128xf32> -> vector<32x128xf32>
    %26 = arith.addf %24, %25 : vector<32x128xf32>
    %cst_16 = arith.constant dense<0.000000e+00> : vector<32x128xf32>
    %27 = tpu.matmul %6, %23, %cst_16 {dimension_numbers = #tpu.dot_dimension_numbers<[1], [0], [0], [1], [0, 0, 1, 1], [], []>} : vector<32x32xf32>, vector<32x128xf32>, vector<32x128xf32> -> vector<32x128xf32>
    %28 = arith.addf %26, %27 : vector<32x128xf32>
    %29 = vector.broadcast %7 : vector<32x1xf32> to vector<32x128xf32>
    %30 = arith.addf %28, %29 : vector<32x128xf32>
    %cst_17 = arith.constant 0.000000e+00 : f32
    %31 = vector.broadcast %cst_17 : f32 to vector<32x128xf32>
    %32 = arith.maximumf %30, %31 : vector<32x128xf32>
    %33 = arith.addf %32, %9 : vector<32x128xf32>
    %c0_18 = arith.constant 0 : index
    %c0_19 = arith.constant 0 : index
    %c0_20 = arith.constant 0 : index
    %34 = vector.load %arg2[%c0_18, %c0_19, %c0_20] : memref<2x1x128xf32, #tpu.memory_space<vmem>>, vector<1x1x128xf32>
    %35 = vector.shape_cast %34 : vector<1x1x128xf32> to vector<1x128xf32>
    %36 = vector.broadcast %35 : vector<1x128xf32> to vector<32x128xf32>
    %37 = arith.mulf %33, %36 : vector<32x128xf32>
    %c0_21 = arith.constant 0 : index
    %c0_22 = arith.constant 0 : index
    %c0_23 = arith.constant 0 : index
    %38 = vector.load %arg5[%c0_21, %c0_22, %c0_23] : memref<2x32x128xf32, #tpu.memory_space<vmem>>, vector<1x32x128xf32>
    %39 = vector.shape_cast %38 : vector<1x32x128xf32> to vector<32x128xf32>
    %40 = vector.shape_cast %37 : vector<32x128xf32> to vector<1x32x128xf32>
    tpu.vector_store %arg5[%c0_21, %c0_22, %c0_23], %40 {strides = array<i32>} : memref<2x32x128xf32, #tpu.memory_space<vmem>>, vector<1x32x128xf32>,
    %c1_24 = arith.constant 1 : index
    %c0_25 = arith.constant 0 : index
    %c0_26 = arith.constant 0 : index
    %41 = vector.load %arg1[%c1_24, %c0_25, %c0_26] : memref<2x32x128xf32, #tpu.memory_space<vmem>>, vector<1x32x128xf32>
    %42 = vector.shape_cast %41 : vector<1x32x128xf32> to vector<32x128xf32>
    %c2_i32_27 = arith.constant 2 : i32
    %43 = vector.broadcast %c2_i32_27 : i32 to vector<1x128xi32>
    %44 = arith.cmpi sge, %0, %43 : vector<1x128xi32>
    %c2_i32_28 = arith.constant 2 : i32
    %45 = tpu.dynamic_rotate %42 by %c2_i32_28 dim 1 : vector<32x128xf32>, i32 -> vector<32x128xf32>
    %cst_29 = arith.constant 0.000000e+00 : f32
    %46 = vector.shape_cast %44 : vector<1x128xi1> to vector<1x128xi1>
    %47 = vector.broadcast %46 : vector<1x128xi1> to vector<32x128xi1>
    %48 = vector.broadcast %cst_29 : f32 to vector<32x128xf32>
    %49 = arith.select %47, %45, %48 : vector<32x128xi1>, vector<32x128xf32>
    %c126_i32_30 = arith.constant 126 : i32
    %50 = vector.broadcast %c126_i32_30 : i32 to vector<1x128xi32>
    %51 = arith.cmpi slt, %0, %50 : vector<1x128xi32>
    %c126_i32_31 = arith.constant 126 : i32
    %52 = tpu.dynamic_rotate %42 by %c126_i32_31 dim 1 : vector<32x128xf32>, i32 -> vector<32x128xf32>
    %cst_32 = arith.constant 0.000000e+00 : f32
    %53 = vector.shape_cast %51 : vector<1x128xi1> to vector<1x128xi1>
    %54 = vector.broadcast %53 : vector<1x128xi1> to vector<32x128xi1>
    %55 = vector.broadcast %cst_32 : f32 to vector<32x128xf32>
    %56 = arith.select %54, %52, %55 : vector<32x128xi1>, vector<32x128xf32>
    %cst_33 = arith.constant dense<0.000000e+00> : vector<32x128xf32>
    %57 = tpu.matmul %2, %49, %cst_33 {dimension_numbers = #tpu.dot_dimension_numbers<[1], [0], [0], [1], [0, 0, 1, 1], [], []>} : vector<32x32xf32>, vector<32x128xf32>, vector<32x128xf32> -> vector<32x128xf32>
    %cst_34 = arith.constant dense<0.000000e+00> : vector<32x128xf32>
    %58 = tpu.matmul %4, %42, %cst_34 {dimension_numbers = #tpu.dot_dimension_numbers<[1], [0], [0], [1], [0, 0, 1, 1], [], []>} : vector<32x32xf32>, vector<32x128xf32>, vector<32x128xf32> -> vector<32x128xf32>
    %59 = arith.addf %57, %58 : vector<32x128xf32>
    %cst_35 = arith.constant dense<0.000000e+00> : vector<32x128xf32>
    %60 = tpu.matmul %6, %56, %cst_35 {dimension_numbers = #tpu.dot_dimension_numbers<[1], [0], [0], [1], [0, 0, 1, 1], [], []>} : vector<32x32xf32>, vector<32x128xf32>, vector<32x128xf32> -> vector<32x128xf32>
    %61 = arith.addf %59, %60 : vector<32x128xf32>
    %62 = vector.broadcast %7 : vector<32x1xf32> to vector<32x128xf32>
    %63 = arith.addf %61, %62 : vector<32x128xf32>
    %cst_36 = arith.constant 0.000000e+00 : f32
    %64 = vector.broadcast %cst_36 : f32 to vector<32x128xf32>
    %65 = arith.maximumf %63, %64 : vector<32x128xf32>
    %66 = arith.addf %65, %42 : vector<32x128xf32>
    %c1_37 = arith.constant 1 : index
    %c0_38 = arith.constant 0 : index
    %c0_39 = arith.constant 0 : index
    %67 = vector.load %arg2[%c1_37, %c0_38, %c0_39] : memref<2x1x128xf32, #tpu.memory_space<vmem>>, vector<1x1x128xf32>
    %68 = vector.shape_cast %67 : vector<1x1x128xf32> to vector<1x128xf32>
    %69 = vector.broadcast %68 : vector<1x128xf32> to vector<32x128xf32>
    %70 = arith.mulf %66, %69 : vector<32x128xf32>
    %c1_40 = arith.constant 1 : index
    %c0_41 = arith.constant 0 : index
    %c0_42 = arith.constant 0 : index
    %71 = vector.load %arg5[%c1_40, %c0_41, %c0_42] : memref<2x32x128xf32, #tpu.memory_space<vmem>>, vector<1x32x128xf32>
    %72 = vector.shape_cast %71 : vector<1x32x128xf32> to vector<32x128xf32>
    %73 = vector.shape_cast %70 : vector<32x128xf32> to vector<1x32x128xf32>
    tpu.vector_store %arg5[%c1_40, %c0_41, %c0_42], %73 {strides = array<i32>} : memref<2x32x128xf32, #tpu.memory_space<vmem>>, vector<1x32x128xf32>,
    return
  }
  func.func @transform_0(%arg0: i32) -> (i32, i32, i32) {
    %c0_i32 = arith.constant 0 : i32
    %c0_i32_0 = arith.constant 0 : i32
    %c0_i32_1 = arith.constant 0 : i32
    return %arg0, %c0_i32, %c0_i32_0 : i32, i32, i32
  }
  func.func @transform_1(%arg0: i32) -> (i32, i32, i32) {
    %c0_i32 = arith.constant 0 : i32
    %c0_i32_0 = arith.constant 0 : i32
    %c0_i32_1 = arith.constant 0 : i32
    return %arg0, %c0_i32, %c0_i32_0 : i32, i32, i32
  }
  func.func @transform_2(%arg0: i32) -> (i32, i32, i32) {
    %c0_i32 = arith.constant 0 : i32
    %c0_i32_0 = arith.constant 0 : i32
    %c0_i32_1 = arith.constant 0 : i32
    %c0_i32_2 = arith.constant 0 : i32
    return %c0_i32, %c0_i32_0, %c0_i32_1 : i32, i32, i32
  }
  func.func @transform_3(%arg0: i32) -> (i32, i32) {
    %c0_i32 = arith.constant 0 : i32
    %c0_i32_0 = arith.constant 0 : i32
    %c0_i32_1 = arith.constant 0 : i32
    return %c0_i32, %c0_i32_0 : i32, i32
  }
  func.func @transform_4(%arg0: i32) -> (i32, i32, i32) {
    %c0_i32 = arith.constant 0 : i32
    %c0_i32_0 = arith.constant 0 : i32
    %c0_i32_1 = arith.constant 0 : i32
    return %arg0, %c0_i32, %c0_i32_0 : i32, i32, i32
  }
}

</mosaic_0001>

<bundles_post_ra>
// kernel: dilated_residual_layer.1
= control target key start
LH: loop header
LB: loop body
LE: loop exit
PB: predicated region body
PF: predicated region fallthrough
CT: control target
= control target key end

     0   :  { %vm72_vm0 = vcmask 261120   ;;  %s1087_s7 = smov 2   ;;  %s1312_s0 = inlined_call_operand.vmem [shape: f32[2,32,128], index: 0, kind: input, shape index: {}]   ;;  %s1313_s1 = inlined_call_operand.vmem [shape: f32[2,1,128], index: 1, kind: input, shape index: {}]   ;;  %s1314_s2 = inlined_call_operand.vmem [shape: f32[3,32,32], index: 2, kind: input, shape index: {}]   ;;  %s1315_s3 = inlined_call_operand.vmem [shape: f32[32,1], index: 3, kind: input, shape index: {}]   ;;  %s1316_s4 = inlined_call_operand.hbm [shape: f32[2,32,128], index: 4, kind: output, shape index: {}]  }
   0x1   :  { %v1121_v0 = vld [vmem:[%s1312_s0] sm:$0xff]  ;;  %v1126_v1 = vld [vmem:[%s1312_s0 + $0x8] sm:$0xff]  ;;  %v1131_v2 = vld [vmem:[%s1312_s0 + $0x10] sm:$0xff] }
   0x2   :  { %v1021_v3 = vpack.i.bf16 %v1126_v1, %v1121_v0  ;;  %v1138_v4 = vld [vmem:[%s1312_s0 + $0x18] sm:$0xff]  ;;  %v1143_v5 = vld [vmem:[%s1312_s0 + $0x20] sm:$0xff]  ;;  %v1148_v6 = vld [vmem:[%s1312_s0 + $0x28] sm:$0xff]  ;;  %v935_v7 = vpack.c.bf16 %v1126_v1, %v1121_v0 }
   0x3   :  { %v1031_v8 = vpack.i.bf16 %v1138_v4, %v1131_v2  ;;  %v1157_v9 = vld [vmem:[%s1312_s0 + $0x30] sm:$0xff]  ;;  %v1162_v10 = vld [vmem:[%s1312_s0 + $0x38] sm:$0xff]  ;;  %v748_v11 = vld [vmem:[%s1314_s2 + $0x20] sm:$0xff]  ;;  %v1026_v12 = vpack.i.bf16 %v1148_v6, %v1143_v5  ;;  %v939_v13 = vpack.c.bf16 %v1138_v4, %v1131_v2  ;;  %v967_v15 = vpack.c.bf16 %v1148_v6, %v1143_v5 }
   0x4   :  { %1022 = vrot.lane.b32.xlu0 %v1021_v3, %s1087_s7  ;;  %936 = vmatprep.subr.bf16.mxu0 %v935_v7  ;;  %v1036_v14 = vpack.i.bf16 %v1162_v10, %v1157_v9  ;;  %v971_v16 = vpack.c.bf16 %v1162_v10, %v1157_v9 }
   0x5   :  { %1032 = vrot.lane.b32.xlu1 %v1031_v8, %s1087_s7  ;;  %938 = vmatpush3.bf16.msra.mxu0 %v935_v7 }
   0x6   :  { %940 = vmatprep.subr.bf16.mxu0 %v939_v13  ;;  %859 = vmatprep.mubr.msk.f32.mxu0 %vm72_vm0, %v748_v11 }
   0x7   :  { %9 = vsyncpa [#allocation3], 0  ;;  %968 = vmatprep.subr.bf16.mxu1 %v967_v15  ;;  %901 = vmatprep.mubr.msk.f32.mxu1 %vm72_vm0, %v748_v11  ;;  %v749_v17 = vld [vmem:[%s1314_s2 + $0x28] sm:$0xff]  ;;  %v750_v18 = vld [vmem:[%s1314_s2 + $0x30] sm:$0xff]  ;;  %s1088_s11 = smov 126   ;;  %v1089_v23 = vmov 0   ;;  %v18_v26 = vlaneseq }
   0x8   :  { %1027 = vrot.lane.b32.xlu0 %v1026_v12, %s1087_s7  ;;  %970 = vmatpush3.bf16.msra.mxu1 %v967_v15  ;;  %v751_v19 = vld [vmem:[%s1314_s2 + $0x38] sm:$0xff]  ;;  %v20_v20 = vld [vmem:[%s1314_s2] sm:$0xff]  ;;  %v35_v21 = vld [vmem:[%s1315_s3 + $0x8] sm:$0xff] }
   0x9   :  { %1037 = vrot.lane.b32.xlu1 %v1036_v14, %s1087_s7  ;;  %942 = vmatpush3.bf16.msra.mxu0 %v939_v13  ;;  %v34_v22 = vld [vmem:[%s1315_s3] sm:$0xff]  ;;  %v37_v24 = vld [vmem:[%s1315_s3 + $0x18] sm:$0xff]  ;;  %v36_v25 = vld [vmem:[%s1315_s3 + $0x10] sm:$0xff]  ;;  %v19_v27 = vand.u32 127, %v18_v26 }
   0xa   :  { %972 = vmatprep.subr.bf16.mxu1 %v971_v16  ;;  %1062 = vset.pattern.permute.xlu1 %v1089_v23  ;;  %v21_v51 = vld [vmem:[%s1314_s2 + $0x8] sm:$0xff]  ;;  %v22_v56 = vld [vmem:[%s1314_s2 + $0x10] sm:$0xff]  ;;  %v23_v62 = vld [vmem:[%s1314_s2 + $0x18] sm:$0xff] }
   0xb   :  { %1061 = vset.pattern.permute.xlu0 %v1089_v23  ;;  %vm42_vm1 = vcmp.ge.s32.totalorder %v19_v27, 2  ;;  %vm57_vm3 = vcmp.lt.s32.totalorder %v19_v27, 126  ;;  %v752_v7 = vld [vmem:[%s1314_s2 + $0x40] sm:$0xff]  ;;  %v754_v11 = vld [vmem:[%s1314_s2 + $0x50] sm:$0xff] }
   0xc   :  { %1042 = vrot.lane.b32.xlu0 %v1021_v3, %s1088_s11  ;;  %860 = vmatmul.mubr.msk.f32.vlgmr.msra.gmra.mrb[0].mxu0 %vm72_vm0, %v749_v17  ;;  %vm1211_vm2 = vmpackc.low %vm42_vm1, %vm42_vm1 }
   0xd   :  { %1047 = vrot.lane.b32.xlu1 %v1026_v12, %s1088_s11  ;;  %974 = vmatpush3.bf16.msra.mxu1 %v971_v16  ;;  %vm1230_vm4 = vmpackc.low %vm57_vm3, %vm57_vm3  ;;  %v755_v12 = vld [vmem:[%s1314_s2 + $0x58] sm:$0xff] }
   0xe   :  { %862 = vmatprep.mubr.msk.f32.mxu0 %vm72_vm0, %v750_v18 }
  0x10   :  { %1052 = vrot.lane.b32.xlu0 %v1031_v8, %s1088_s11  ;;  %863 = vmatmul.mubr.msk.f32.gmra.mrb[2].mxu0 %vm72_vm0, %v751_v19  ;;  %v753_v8 = vld [vmem:[%s1314_s2 + $0x48] sm:$0xff] }
  0x11   :  { %1057 = vrot.lane.b32.xlu1 %v1036_v14, %s1088_s11  ;;  %902 = vmatmul.mubr.msk.f32.vlgmr.msra.gmra.mrb[0].mxu1 %vm72_vm0, %v749_v17 }
  0x12   :  { %873 = vmatprep.mubr.msk.f32.mxu0 %vm72_vm0, %v20_v20  ;;  %904 = vmatprep.mubr.msk.f32.mxu1 %vm72_vm0, %v750_v18 }
  0x14   :  { %370 = vperm.xlu0 %1061, %v34_v22   ;;  %v776_v22 = vld [vmem:[%s1313_s1] ss:$0 sm:$0xff] }
  0x15   :  { %905 = vmatmul.mubr.msk.f32.gmra.mrb[2].mxu1 %vm72_vm0, %v751_v19  ;;  %375 = vperm.xlu1 %1062, %v35_v21  }
  0x16   :  { %915 = vmatprep.mubr.msk.f32.mxu1 %vm72_vm0, %v20_v20 }
  0x18   :  { %385 = vperm.xlu0 %1061, %v37_v24  }
  0x19   :  { %380 = vperm.xlu1 %1062, %v36_v25  }
  0x76   :  { %v1023_v28 = vpop.permute.xlu0 %1022 }
  0x77   :  { %v1025_v29 = vunpack.i.h.bf16 %v1023_v28  ;;  %v1024_v30 = vunpack.i.l.bf16 %v1023_v28  ;;  %v1033_v31 = vpop.permute.xlu1 %1032 }
  0x78   :  { %v1035_v32 = vunpack.i.h.bf16 %v1033_v31  ;;  %v1034_v33 = vunpack.i.l.bf16 %v1033_v31 }
  0x79   :  { %v943_v35 = vpack.c.bf16 %v1025_v29, %v1024_v30 }
  0x7a   :  { %v949_v36 = vpack.c.bf16 %v1035_v32, %v1034_v33  ;;  %v1028_v37 = vpop.permute.xlu0 %1027 }
  0x7b   :  { %v1030_v38 = vunpack.i.h.bf16 %v1028_v37  ;;  %v1029_v39 = vunpack.i.l.bf16 %v1028_v37  ;;  %945 = vmatprep.subr.msk.bf16.mxu0 %vm1211_vm2, %v943_v35  ;;  %v1038_v40 = vpop.permute.xlu1 %1037 }
  0x7c   :  { %948 = vmatpush3.bf16.msk.msra.mxu0 %vm1211_vm2, %v943_v35  ;;  %v1040_v41 = vunpack.i.h.bf16 %v1038_v40  ;;  %v1039_v42 = vunpack.i.l.bf16 %v1038_v40 }
  0x7d   :  { %v975_v43 = vpack.c.bf16 %v1030_v38, %v1029_v39  ;;  %951 = vmatprep.subr.msk.bf16.mxu0 %vm1211_vm2, %v949_v36 }
  0x7e   :  { %v981_v44 = vpack.c.bf16 %v1040_v41, %v1039_v42  ;;  %v1043_v45 = vpop.permute.xlu0 %1042 }
  0x7f   :  { %v1045_v46 = vunpack.i.h.bf16 %v1043_v45  ;;  %v1044_v47 = vunpack.i.l.bf16 %v1043_v45  ;;  %977 = vmatprep.subr.msk.bf16.mxu1 %vm1211_vm2, %v975_v43  ;;  %v1048_v48 = vpop.permute.xlu1 %1047 }
  0x80   :  { %954 = vmatpush3.bf16.msk.msra.mxu0 %vm1211_vm2, %v949_v36  ;;  %980 = vmatpush3.bf16.msk.msra.mxu1 %vm1211_vm2, %v975_v43  ;;  %v1050_v49 = vunpack.i.h.bf16 %v1048_v48  ;;  %v1049_v50 = vunpack.i.l.bf16 %v1048_v48 }
  0x81   :  { %v955_v53 = vpack.c.bf16 %v1045_v46, %v1044_v47  ;;  %983 = vmatprep.subr.msk.bf16.mxu1 %vm1211_vm2, %v981_v44 }
  0x82   :  { %v987_v54 = vpack.c.bf16 %v1050_v49, %v1049_v50  ;;  %v1053_v55 = vpop.permute.xlu0 %1052 }
  0x83   :  { %v1055_v57 = vunpack.i.h.bf16 %v1053_v55  ;;  %v1054_v58 = vunpack.i.l.bf16 %v1053_v55  ;;  %874 = vmatmul.mubr.msk.f32.vlgmr.msra.gmra.mrb[0].mxu0 %vm72_vm0, %v21_v51  ;;  %957 = vmatprep.subr.msk.bf16.mxu0 %vm1230_vm4, %v955_v53  ;;  %v1058_v59 = vpop.permute.xlu1 %1057 }
  0x84   :  { %960 = vmatpush3.bf16.msk.msra.mxu0 %vm1230_vm4, %v955_v53  ;;  %986 = vmatpush3.bf16.msk.msra.mxu1 %vm1211_vm2, %v981_v44  ;;  %v1060_v60 = vunpack.i.h.bf16 %v1058_v59  ;;  %v1059_v61 = vunpack.i.l.bf16 %v1058_v59 }
  0x85   :  { %v961_v63 = vpack.c.bf16 %v1055_v57, %v1054_v58  ;;  %876 = vmatprep.mubr.msk.f32.mxu0 %vm72_vm0, %v22_v56  ;;  %989 = vmatprep.subr.msk.bf16.mxu1 %vm1230_vm4, %v987_v54 }
  0x86   :  { %v993_v3 = vpack.c.bf16 %v1060_v60, %v1059_v61 }
  0x87   :  { %877 = vmatmul.mubr.msk.f32.gmra.mrb[2].mxu0 %vm72_vm0, %v23_v62  ;;  %963 = vmatprep.subr.msk.bf16.mxu0 %vm1230_vm4, %v961_v63 }
  0x88   :  { %916 = vmatmul.mubr.msk.f32.vlgmr.msra.gmra.mrb[0].mxu1 %vm72_vm0, %v21_v51  ;;  %966 = vmatpush3.bf16.msk.msra.mxu0 %vm1230_vm4, %v961_v63 }
  0x89   :  { %992 = vmatpush3.bf16.msk.msra.mxu1 %vm1230_vm4, %v987_v54  ;;  %887 = vmatprep.mubr.msk.f32.mxu0 %vm72_vm0, %v752_v7 }
  0x8a   :  { %918 = vmatprep.mubr.msk.f32.mxu1 %vm72_vm0, %v22_v56  ;;  %995 = vmatprep.subr.msk.bf16.mxu1 %vm1230_vm4, %v993_v3 }
  0x8b   :  { %888 = vmatmul.mubr.msk.f32.vlgmr.msra.gmra.mrb[0].mxu0 %vm72_vm0, %v753_v8 }
  0x8c   :  { %919 = vmatmul.mubr.msk.f32.gmra.mrb[2].mxu1 %vm72_vm0, %v23_v62  ;;  %890 = vmatprep.mubr.msk.f32.mxu0 %vm72_vm0, %v754_v11 }
  0x8d   :  { %998 = vmatpush3.bf16.msk.msra.mxu1 %vm1230_vm4, %v993_v3  ;;  %929 = vmatprep.mubr.msk.f32.mxu1 %vm72_vm0, %v752_v7 }
  0x8f   :  { %891 = vmatmul.mubr.msk.f32.gmra.mrb[2].mxu0 %vm72_vm0, %v755_v12 }
  0x90   :  { %930 = vmatmul.mubr.msk.f32.vlgmr.msra.gmra.mrb[0].mxu1 %vm72_vm0, %v753_v8 }
  0x91   :  { %932 = vmatprep.mubr.msk.f32.mxu1 %vm72_vm0, %v754_v11 }
  0x93   :  { %v371_v13 = vpop.permute.xlu0 %370 }
  0x94   :  { %933 = vmatmul.mubr.msk.f32.gmra.mrb[2].mxu1 %vm72_vm0, %v755_v12  ;;  %v376_v14 = vpop.permute.xlu1 %375 }
  0x97   :  { %v386_v19 = vpop.permute.xlu0 %385 }
  0x98   :  { %v381_v21 = vpop.permute.xlu1 %380 }
 0x15e   :  { %v889_v15 = vpop.f32.mrb[0].mxu0 }
 0x15f   :  { %v389_v16 = vadd.f32 %v889_v15, %v376_v14  ;;  %v345_v17 = vpop.f32.mrb[1].mxu0 }
 0x160   :  { %v388_v18 = vadd.f32 %v371_v13, %v345_v17 }
 0x161   :  { %v393_v20 = vmax.f32 %v389_v16, 0.0 }
 0x162   :  { %v392_v23 = vmax.f32 %v388_v18, 0.0  ;;  %v892_v24 = vpop.f32.mrb[2].mxu0 }
 0x163   :  { %v397_v25 = vadd.f32 %v393_v20, %v1126_v1  ;;  %v391_v26 = vadd.f32 %v892_v24, %v386_v19  ;;  %v931_v27 = vpop.f32.mrb[0].mxu1  ;;  %v355_v28 = vpop.f32.mrb[3].mxu0  ;;  %v802_v1 = vld [vmem:[%s1313_s1 + $0x1] ss:$0 sm:$0xff]  ;;  %s1090_s1 = smov [#allocation2]  }
 0x164   :  { %v396_v29 = vadd.f32 %v392_v23, %v1121_v0  ;;  %v704_v30 = vadd.f32 %v931_v27, %v376_v14  ;;  %v390_v31 = vadd.f32 %v381_v21, %v355_v28  ;;  %v680_v32 = vpop.f32.mrb[1].mxu1  ;;  %s737_s13 = sshll.u32 %s1090_s1, 4  ;;  %s738_s13 = int_to_ptr.vmem [resolvable:$true] %s737_s13 }
 0x165   :  { %v408_v33 = vmul.f32 %v776_v22, %v397_v25  ;;  %v395_v34 = vmax.f32 %v391_v26, 0.0  ;;  %v703_v35 = vadd.f32 %v680_v32, %v371_v13  ;;  %s1063_s14 = scalar_lea.vmem %s738_s13, 1024  ;;  %p1068_p1 = scmp.lt.s32.totalorder %s738_s13, %s738_s13 }
 0x166   :  { %v407_v36 = vmul.f32 %v776_v22, %v396_v29  ;;  %v708_v37 = vmax.f32 %v704_v30, 0.0  ;;  %v394_v38 = vmax.f32 %v390_v31, 0.0  ;;  %p1064_p0 = scmp.ne.s32.totalorder %s738_s13, %s1063_s14  ;;  %p1069_p2 = scmp.lt.s32.totalorder %s1063_s14, %s1063_s14 }
 0x167   :  { %412 = vst [vmem:[#allocation2 + $0x8] sm:$0xff] %v408_v33  ;;  %v399_v39 = vadd.f32 %v395_v34, %v1138_v4  ;;  %v707_v40 = vmax.f32 %v703_v35, 0.0  ;;  %v934_v41 = vpop.f32.mrb[2].mxu1 }
 0x168   :  { %411 = vst [vmem:[#allocation2] sm:$0xff] %v407_v36  ;;  %v712_v0 = vadd.f32 %v1148_v6, %v708_v37  ;;  %v398_v42 = vadd.f32 %v394_v38, %v1131_v2  ;;  %v706_v43 = vadd.f32 %v934_v41, %v386_v19  ;;  %v690_v44 = vpop.f32.mrb[3].mxu1  ;;  %p1070_p3 = por %p1069_p2, %p1068_p1 }
 0x169   :  { %v410_v45 = vmul.f32 %v776_v22, %v399_v39  ;;  %v711_v46 = vadd.f32 %v1143_v5, %v707_v40  ;;  %v705_v47 = vadd.f32 %v690_v44, %v381_v21 }
 0x16a   :  { %v724_v48 = vmul.f32 %v802_v1, %v712_v0  ;;  %v409_v49 = vmul.f32 %v776_v22, %v398_v42  ;;  %v710_v4 = vmax.f32 %v706_v43, 0.0  ;;  %p1071_p4 = pnand %p1070_p3, %p1064_p0 }
 0x16b   :  { %414 = vst [vmem:[#allocation2 + $0x18] sm:$0xff] %v410_v45  ;;  %v723_v50 = vmul.f32 %v802_v1, %v711_v46  ;;  %v709_v51 = vmax.f32 %v705_v47, 0.0 }
 0x16c   :  { %729 = vst [vmem:[#allocation2 + $0x28] sm:$0xff] %v724_v48  ;;  %413 = vst [vmem:[#allocation2 + $0x10] sm:$0xff] %v409_v49  ;;  %v714_v6 = vadd.f32 %v1162_v10, %v710_v4 }
 0x16d   :  { %728 = vst [vmem:[#allocation2 + $0x20] sm:$0xff] %v723_v50  ;;  %v713_v2 = vadd.f32 %v1157_v9, %v709_v51 }
 0x16e   :  { %v726_v52 = vmul.f32 %v802_v1, %v714_v6 }
 0x16f   :  { %v725_v53 = vmul.f32 %v802_v1, %v713_v2 }
 0x170   :  { %731 = vst [vmem:[#allocation2 + $0x38] sm:$0xff] %v726_v52 }
 0x171   :  { %730 = vst [vmem:[#allocation2 + $0x30] sm:$0xff] %v725_v53 }
 0x172   :  { %1074 = shalt.err (!%p1071_p4)
}
 0x173   :  { %s1075_s17 = scalar_lea.hbm %s1316_s4, 1024 }
 0x174   :  { %p1076_p5 = scmp.ne.s32.totalorder %s1316_s4, %s1075_s17  ;;  %p1079_p6 = scmp.lt.u32.totalorder %s1075_s17, %s1316_s4 }
 0x176   :  { %p1081_p7 = pnand %p1079_p6, %p1076_p5 }
 0x178   :  { %1084 = shalt.err (!%p1081_p7)
}
 0x179   :  { %s1091_s22 = smov 128   ;;  %s1092_s23 = smov 8  }
 0x17a   :  { %743 = dma.vmem_to_hbm [thread:$0]  %s738_s13, 1024, %s1316_s4, [#allocation3], %s1091_s22, %s1091_s22, %s1092_s23  }
 0x17b   :  { %1085 = dma.done.wait [#allocation3], 1024  }
 0x17c   :  { %1086 = vsyncadd [#allocation3], 4294966272 }
 0x17d   :  { %747 = vsyncpa [#allocation3], 1 }

</bundles_post_ra>
